<compile_context>
chip_gen: v7x
topology: tpu7x:2x2x1
jax: 0.10.0
libtpu: 0.0.40
codegen_flags: <defaults>
</compile_context>

<pallas_src>
import jax
import jax.numpy as jnp
from jax import lax
from jax.experimental import pallas as pl
from jax.experimental.pallas import tpu as pltpu

BN_EPS = 1e-5


# ----------------------------------------------------------------------------
# Fused kernel: (1x1 conv -> ReLU -> GAP) per image, then Linear + BatchNorm1d
# over the whole batch, all in one invocation with everything VMEM-resident.
# ----------------------------------------------------------------------------
def encoder_kernel(x_ref, wc_ref, we_ref, be_ref, gamma_ref, beta_ref,
                   o_ref, pooled_ref):
    """x_ref: (N, Cin, HW) native NCHW (HW merged).  o_ref: (N, E)."""
    n_img = x_ref.shape[0]
    hw = x_ref.shape[2]
    wc = wc_ref[...]                                          # (Cin, F)
    # 1/HW folded into the pooling vector -> pooling becomes an MXU matmul.
    pool_vec = jnp.full((1, hw), 1.0 / hw, dtype=jnp.float32)

    # --- backbone stage: per-image conv-as-matmul -> ReLU -> avg pool -------
    def body(n, carry):
        xn = x_ref[n]                                         # (Cin, HW)
        feat = lax.dot_general(                               # xn^T @ wc
            xn, wc, (((0,), (0,)), ((), ())),
            preferred_element_type=jnp.float32)               # (HW, F) MXU
        feat = jnp.maximum(feat, 0.0)                         # ReLU (VPU)
        row = jnp.dot(pool_vec, feat,
                      preferred_element_type=jnp.float32)     # (1, F) pool
        pooled_ref[pl.ds(n, 1), :] = row
        return carry

    lax.fori_loop(0, n_img, body, 0)

    # --- epilogue: Linear (PyTorch (E, F) weight, contract on F) + BN -------
    pooled = pooled_ref[...]                                  # (N, F)
    y = lax.dot_general(pooled, we_ref[...],
                        (((1,), (1,)), ((), ())),
                        preferred_element_type=jnp.float32)   # (N, E)
    y = y + be_ref[...]
    mean = jnp.mean(y, axis=0, keepdims=True)                 # batch mean
    var = jnp.mean((y - mean) ** 2, axis=0, keepdims=True)    # biased var
    y_hat = (y - mean) * lax.rsqrt(var + BN_EPS)
    o_ref[...] = y_hat * gamma_ref[...] + beta_ref[...]       # dense (N, E)


def encoder_cnn_forward(images, wc, we, be, gamma, beta):
    """images: (N, Cin, H, W) float32 (NCHW, like PyTorch)."""
    N, Cin, H, W = images.shape
    HW = H * W
    F = wc.shape[1]          # backbone feature dim ("resnet.fc.in_features")
    E = we.shape[0]          # embed_size

    x = images.reshape(N, Cin, HW)   # free reshape; NO HBM transpose

    flops = 2 * N * HW * Cin * F + 2 * N * HW * F + 2 * N * F * E
    bytes_accessed = 4 * (x.size + wc.size + we.size + 3 * E + N * E)

    return pl.pallas_call(
        encoder_kernel,
        out_shape=jax.ShapeDtypeStruct((N, E), jnp.float32),
        in_specs=[pl.BlockSpec(memory_space=pltpu.MemorySpace.VMEM)] * 6,
        out_specs=pl.BlockSpec(memory_space=pltpu.MemorySpace.VMEM),
        scratch_shapes=[pltpu.VMEM((N, F), jnp.float32)],     # pooled features
        cost_estimate=pl.CostEstimate(flops=flops, transcendentals=0,
                                      bytes_accessed=bytes_accessed),
    )(x, wc, we, be.reshape(1, E), gamma.reshape(1, E), beta.reshape(1, E))


def reference_forward(images, wc, we, be, gamma, beta):
    N, Cin, H, W = images.shape
    x = jnp.transpose(images.reshape(N, Cin, H * W), (0, 2, 1)).astype(jnp.float32)
    feat = jnp.maximum(jnp.einsum("nsc,cf->nsf", x, wc), 0.0)
    pooled = jnp.mean(feat, axis=1)                      # (N, F)
    y = pooled @ we.T + be                               # Linear
    mean = jnp.mean(y, axis=0, keepdims=True)
    var = jnp.mean((y - mean) ** 2, axis=0, keepdims=True)
    return (y - mean) * jax.lax.rsqrt(var + BN_EPS) * gamma + beta


if __name__ == "__main__":
    # small shapes consistent with the module: batch=8, 8-channel 16x16 images,
    # backbone feature dim 256 (stands in for 2048), embed_size=128.
    N, Cin, H, W = 8, 8, 16, 16
    FEAT, EMBED = 256, 128

    key = jax.random.PRNGKey(0)
    k_img, k_wc, k_we, k_be, k_g, k_b = jax.random.split(key, 6)

    images = jax.random.normal(k_img, (N, Cin, H, W), dtype=jnp.float32)
    wc = jax.random.normal(k_wc, (Cin, FEAT), dtype=jnp.float32) * 0.1     # 1x1 conv weight
    we = jax.random.normal(k_we, (EMBED, FEAT), dtype=jnp.float32) * 0.05  # Linear (E, F)
    be = jax.random.normal(k_be, (EMBED,), dtype=jnp.float32) * 0.01       # Linear bias
    gamma = 1.0 + 0.1 * jax.random.normal(k_g, (EMBED,), dtype=jnp.float32)  # BN weight
    beta = 0.1 * jax.random.normal(k_b, (EMBED,), dtype=jnp.float32)         # BN bias

    out = jax.block_until_ready(
        encoder_cnn_forward(images, wc, we, be, gamma, beta))
    ref = reference_forward(images, wc, we, be, gamma, beta)

    assert out.shape == (N, EMBED), out.shape
    assert jnp.allclose(out, ref, atol=1e-4, rtol=1e-4), (
        float(jnp.max(jnp.abs(out - ref))))

    print("KERNEL_OK")
</pallas_src>

<mosaic_0001>
module attributes {stable_mosaic.version = 11 : i64} {
  func.func @encoder_kernel(%arg0: memref<8x8x256xf32, #tpu.memory_space<vmem>>, %arg1: memref<8x256xf32, #tpu.memory_space<vmem>>, %arg2: memref<128x256xf32, #tpu.memory_space<vmem>>, %arg3: memref<1x128xf32, #tpu.memory_space<vmem>>, %arg4: memref<1x128xf32, #tpu.memory_space<vmem>>, %arg5: memref<1x128xf32, #tpu.memory_space<vmem>>, %arg6: memref<8x128xf32, #tpu.memory_space<vmem>>, %arg7: memref<8x256xf32, #tpu.memory_space<vmem>>) attributes {dimension_semantics = [], scalar_prefetch = 0 : i64, scratch_operands = 1 : i64, tpu.core_type = #tpu.core_type<tc>} {
    %c0 = arith.constant 0 : index
    %c0_0 = arith.constant 0 : index
    %0 = vector.load %arg1[%c0, %c0_0] : memref<8x256xf32, #tpu.memory_space<vmem>>, vector<8x256xf32>
    %cst = arith.constant 3.906250e-03 : f32
    %1 = vector.broadcast %cst : f32 to vector<1x256xf32>
    %c0_i32 = arith.constant 0 : i32
    %c8_i32 = arith.constant 8 : i32
    %2 = arith.addi %c0_i32, %c8_i32 : i32
    %c1_i32 = arith.constant 1 : i32
    scf.for %arg8 = %c0_i32 to %2 step %c1_i32  : i32 {
      %34 = arith.index_cast %arg8 : i32 to index
      %c0_20 = arith.constant 0 : index
      %c0_21 = arith.constant 0 : index
      %35 = vector.load %arg0[%34, %c0_20, %c0_21] : memref<8x8x256xf32, #tpu.memory_space<vmem>>, vector<1x8x256xf32>
      %36 = vector.shape_cast %35 : vector<1x8x256xf32> to vector<8x256xf32>
      %cst_22 = arith.constant dense<0.000000e+00> : vector<256x256xf32>
      %37 = tpu.matmul %36, %0, %cst_22 {dimension_numbers = #tpu.dot_dimension_numbers<[0], [0], [1], [1], [0, 1, 1, 1], [], []>} : vector<8x256xf32>, vector<8x256xf32>, vector<256x256xf32> -> vector<256x256xf32>
      %cst_23 = arith.constant 0.000000e+00 : f32
      %38 = vector.broadcast %cst_23 : f32 to vector<256x256xf32>
      %39 = arith.maximumf %37, %38 : vector<256x256xf32>
      %cst_24 = arith.constant dense<0.000000e+00> : vector<1x256xf32>
      %40 = tpu.matmul %1, %39, %cst_24 {dimension_numbers = #tpu.dot_dimension_numbers<[1], [0], [0], [1], [0, 0, 1, 1], [], []>} : vector<1x256xf32>, vector<256x256xf32>, vector<1x256xf32> -> vector<1x256xf32>
      %41 = arith.index_cast %arg8 : i32 to index
      %c0_25 = arith.constant 0 : index
      %42 = vector.load %arg7[%41, %c0_25] : memref<8x256xf32, #tpu.memory_space<vmem>>, vector<1x256xf32>
      tpu.vector_store %arg7[%41, %c0_25], %40 {strides = array<i32>} : memref<8x256xf32, #tpu.memory_space<vmem>>, vector<1x256xf32>,
    }
    %c8_i32_1 = arith.constant 8 : i32
    %c0_2 = arith.constant 0 : index
    %c0_3 = arith.constant 0 : index
    %3 = vector.load %arg7[%c0_2, %c0_3] : memref<8x256xf32, #tpu.memory_space<vmem>>, vector<8x256xf32>
    %c0_4 = arith.constant 0 : index
    %c0_5 = arith.constant 0 : index
    %4 = vector.load %arg2[%c0_4, %c0_5] : memref<128x256xf32, #tpu.memory_space<vmem>>, vector<128x256xf32>
    %cst_6 = arith.constant dense<0.000000e+00> : vector<8x128xf32>
    %5 = tpu.matmul %3, %4, %cst_6 {dimension_numbers = #tpu.dot_dimension_numbers<[1], [1], [0], [0], [0, 0, 1, 0], [], []>} : vector<8x256xf32>, vector<128x256xf32>, vector<8x128xf32> -> vector<8x128xf32>
    %c0_7 = arith.constant 0 : index
    %c0_8 = arith.constant 0 : index
    %6 = vector.load %arg3[%c0_7, %c0_8] : memref<1x128xf32, #tpu.memory_space<vmem>>, vector<1x128xf32>
    %7 = vector.broadcast %6 : vector<1x128xf32> to vector<8x128xf32>
    %8 = arith.addf %5, %7 : vector<8x128xf32>
    %cst_9 = arith.constant dense<0.000000e+00> : vector<128xf32>
    %9 = vector.multi_reduction <add>, %8, %cst_9 [0] : vector<8x128xf32> to vector<128xf32>
    %10 = vector.shape_cast %9 : vector<128xf32> to vector<1x128xf32>
    %cst_10 = arith.constant 8.000000e+00 : f32
    %11 = vector.broadcast %cst_10 : f32 to vector<1x128xf32>
    %12 = arith.divf %10, %11 : vector<1x128xf32>
    %13 = vector.broadcast %12 : vector<1x128xf32> to vector<8x128xf32>
    %14 = arith.subf %8, %13 : vector<8x128xf32>
    %15 = arith.mulf %14, %14 : vector<8x128xf32>
    %cst_11 = arith.constant dense<0.000000e+00> : vector<128xf32>
    %16 = vector.multi_reduction <add>, %15, %cst_11 [0] : vector<8x128xf32> to vector<128xf32>
    %17 = vector.shape_cast %16 : vector<128xf32> to vector<1x128xf32>
    %cst_12 = arith.constant 8.000000e+00 : f32
    %18 = vector.broadcast %cst_12 : f32 to vector<1x128xf32>
    %19 = arith.divf %17, %18 : vector<1x128xf32>
    %20 = vector.broadcast %12 : vector<1x128xf32> to vector<8x128xf32>
    %21 = arith.subf %8, %20 : vector<8x128xf32>
    %cst_13 = arith.constant 9.99999974E-6 : f32
    %22 = vector.broadcast %cst_13 : f32 to vector<1x128xf32>
    %23 = arith.addf %19, %22 : vector<1x128xf32>
    %24 = math.rsqrt %23 : vector<1x128xf32>
    %25 = vector.broadcast %24 : vector<1x128xf32> to vector<8x128xf32>
    %26 = arith.mulf %21, %25 : vector<8x128xf32>
    %c0_14 = arith.constant 0 : index
    %c0_15 = arith.constant 0 : index
    %27 = vector.load %arg4[%c0_14, %c0_15] : memref<1x128xf32, #tpu.memory_space<vmem>>, vector<1x128xf32>
    %28 = vector.broadcast %27 : vector<1x128xf32> to vector<8x128xf32>
    %29 = arith.mulf %26, %28 : vector<8x128xf32>
    %c0_16 = arith.constant 0 : index
    %c0_17 = arith.constant 0 : index
    %30 = vector.load %arg5[%c0_16, %c0_17] : memref<1x128xf32, #tpu.memory_space<vmem>>, vector<1x128xf32>
    %31 = vector.broadcast %30 : vector<1x128xf32> to vector<8x128xf32>
    %32 = arith.addf %29, %31 : vector<8x128xf32>
    %c0_18 = arith.constant 0 : index
    %c0_19 = arith.constant 0 : index
    %33 = vector.load %arg6[%c0_18, %c0_19] : memref<8x128xf32, #tpu.memory_space<vmem>>, vector<8x128xf32>
    tpu.vector_store %arg6[%c0_18, %c0_19], %32 {strides = array<i32>} : memref<8x128xf32, #tpu.memory_space<vmem>>, vector<8x128xf32>,
    return
  }
}

</mosaic_0001>

<bundles_post_ra>
// kernel: tpu_custom_call.1
= control target key start
LH: loop header
LB: loop body
LE: loop exit
PB: predicated region body
PF: predicated region fallthrough
CT: control target
= control target key end

     0   :  { %11 = vsyncpa [#allocation4], 0  ;;  %s1284_s0 = inlined_call_operand.hbm [shape: f32[8,8,256], index: 0, kind: input, shape index: {}]   ;;  %s1285_s1 = inlined_call_operand.hbm [shape: f32[8,256], index: 1, kind: input, shape index: {}]   ;;  %s1286_s2 = inlined_call_operand.hbm [shape: f32[128,256], index: 2, kind: input, shape index: {}]   ;;  %s1287_s3 = inlined_call_operand.vmem [shape: f32[1,128], index: 3, kind: input, shape index: {}]   ;;  %s1288_s4 = inlined_call_operand.vmem [shape: f32[1,128], index: 4, kind: input, shape index: {}]   ;;  %s1289_s5 = inlined_call_operand.vmem [shape: f32[1,128], index: 5, kind: input, shape index: {}]   ;;  %s1290_s6 = inlined_call_operand.hbm [shape: f32[8,128], index: 6, kind: output, shape index: {}]  }
   0x1   :  { %12 = vsyncpa [#allocation7], 0 }
   0x2   :  { %13 = vsyncpa [#allocation5], 0  ;;  %s1093_s21 = smov [#allocation6]   ;;  %s1094_s23 = smov [#allocation3]  }
   0x3   :  { %s32_s22 = sshll.u32 %s1093_s21, 4  ;;  %s19_s24 = sshll.u32 %s1094_s23, 4  ;;  %s33_s22 = int_to_ptr.vmem [resolvable:$true] %s32_s22  ;;  %s1137_s24 = int_to_ptr.vmem [resolvable:$true] %s19_s24 }
   0x4   :  { %s991_s27 = scalar_lea.hbm %s1285_s1, 256 }
   0x5   :  { %p992_p0 = scmp.ne.s32.totalorder %s1285_s1, %s991_s27  ;;  %p995_p1 = scmp.lt.u32.totalorder %s991_s27, %s1285_s1 }
   0x7   :  { %p997_p2 = pnand %p995_p1, %p992_p0 }
   0x9   :  { %1000 = shalt.err (!%p997_p2)
}
   0xa   :  { %s1001_s8 = scalar_lea.vmem %s33_s22, 256  ;;  %p1006_p4 = scmp.lt.s32.totalorder %s33_s22, %s33_s22 }
   0xb   :  { %p1002_p3 = scmp.ne.s32.totalorder %s33_s22, %s1001_s8  ;;  %p1007_p5 = scmp.lt.s32.totalorder %s1001_s8, %s1001_s8 }
   0xd   :  { %p1008_p6 = por %p1007_p5, %p1006_p4 }
   0xf   :  { %p1009_p7 = pnand %p1008_p6, %p1002_p3 }
  0x11   :  { %1012 = shalt.err (!%p1009_p7)
}
  0x12   :  { %35 = dma.hbm_to_vmem [thread:$0]  %s1285_s1, 256, %s33_s22, [#allocation7]  }
  0x13   :  { %s1013_s13 = scalar_lea.hbm %s1284_s0, 2048 }
  0x14   :  { %p1014_p8 = scmp.ne.s32.totalorder %s1284_s0, %s1013_s13  ;;  %p1017_p9 = scmp.lt.u32.totalorder %s1013_s13, %s1284_s0 }
  0x16   :  { %p1019_p10 = pnand %p1017_p9, %p1014_p8 }
  0x18   :  { %1022 = shalt.err (!%p1019_p10)
}
  0x19   :  { %s1023_s18 = scalar_lea.vmem %s1137_s24, 2048  ;;  %p1028_p12 = scmp.lt.s32.totalorder %s1137_s24, %s1137_s24 }
  0x1a   :  { %p1024_p11 = scmp.ne.s32.totalorder %s1137_s24, %s1023_s18  ;;  %p1029_p13 = scmp.lt.s32.totalorder %s1023_s18, %s1023_s18 }
  0x1c   :  { %p1030_p0 = por %p1029_p13, %p1028_p12 }
  0x1e   :  { %p1031_p1 = pnand %p1030_p0, %p1024_p11 }
  0x20   :  { %1034 = shalt.err (!%p1031_p1)
}
  0x21   :  { %s1095_s1 = smov 256   ;;  %s1096_s19 = smov 16  }
  0x22   :  { %25 = dma.hbm_to_vmem [thread:$0]  %s1284_s0, 2048, %s1137_s24, [#allocation4], %s1095_s1, %s1095_s1, %s1096_s19  }
  0x23   :  { %s1097_s22 = smov [#allocation8]   ;;  %s1035_s27 = scalar_lea.hbm %s1286_s2, 4096 }
  0x24   :  { %s41_s23 = sshll.u32 %s1097_s22, 4  ;;  %p1036_p2 = scmp.ne.s32.totalorder %s1286_s2, %s1035_s27  ;;  %s42_s23 = int_to_ptr.vmem [resolvable:$true] %s41_s23 }
  0x25   :  { %p1039_p3 = scmp.lt.u32.totalorder %s1035_s27, %s1286_s2 }
  0x27   :  { %p1041_p4 = pnand %p1039_p3, %p1036_p2 }
  0x29   :  { %1044 = shalt.err (!%p1041_p4)
}
  0x2a   :  { %s1045_s8 = scalar_lea.vmem %s42_s23, 4096  ;;  %p1050_p6 = scmp.lt.s32.totalorder %s42_s23, %s42_s23 }
  0x2b   :  { %p1046_p5 = scmp.ne.s32.totalorder %s42_s23, %s1045_s8  ;;  %p1051_p7 = scmp.lt.s32.totalorder %s1045_s8, %s1045_s8 }
  0x2d   :  { %p1052_p8 = por %p1051_p7, %p1050_p6 }
  0x2f   :  { %p1053_p9 = pnand %p1052_p8, %p1046_p5 }
  0x31   :  { %1056 = shalt.err (!%p1053_p9)
}
  0x32   :  { %47 = dma.hbm_to_vmem [thread:$0]  %s1286_s2, 4096, %s42_s23, [#allocation7], %s1095_s1, %s1095_s1, %s1096_s19  }
  0x33   :  { %1083 = dma.done.wait [#allocation4], 2048  }
  0x34   :  { %1084 = vsyncadd [#allocation4], 4294965248 }
  0x35   :  { %1085 = dma.done.wait [#allocation7], 4352  }
  0x36   :  { %1086 = vsyncadd [#allocation7], 4294962944  ;;  %v1180_v0 = vld [vmem:[#allocation6] sm:$0xff]  ;;  %v1182_v1 = vld [vmem:[#allocation6 + $0x8] sm:$0xff]  ;;  %s1184_s9 = smov 0  }
  0x37 LB: > { %237 = vmatprep.subr.mxu0 %v1182_v1  ;;  %v1098_v2 = vmov 0.0   ;;  %s874_s2 = sshll.u32 %s1091_s9, 4  ;;  %vm140_vm0 = vcmask 64512   ;;  %v1099_v40 = vmov 0.00390625   ;;  %s651_s11 = sshra.s32 %s1091_s9, 3  ;;  %s1091_s9 = sphi %s1184_s9, %s70_s9  }
  0x38   : > { %238 = vmatpush1.msra.mxu0 %v1180_v0  ;;  %301 = vmatprep.mubr.f32.mxu0 %v1098_v2  ;;  %s73_s10 = scalar_lea.vmem [#allocation3], %s874_s2  ;;  %s654_s12 = sand.u32 7, %s1091_s9 }
  0x39   : > { %v74_v3 = vld [vmem:[%s73_s10] sm:$0xff]  ;;  %v75_v4 = vld [vmem:[%s73_s10 + $0x8] sm:$0xff]  ;;  %622 = vmatprep.mubr.f32.mxu1 %v1099_v40  ;;  %s875_s13 = sshll.u32 %s651_s11, 4  ;;  %s70_s9 = sadd.s32 1, %s1091_s9  }
  0x3a   : > { %76 = vxpose.xlu0.b32.start.end [1/1] (short) %v74_v3, 128  ;;  %s657_s14 = sadd.s32 %s875_s13, %s654_s12  ;;  %p67_p10 = scmp.ge.s32.totalorder %s70_s9, 8  }
  0x3b   : > { %s658_s15 = scalar_lea.vmem [#allocation2], %s657_s14  ;;  %v671_v0 = vld [vmem:[#allocation8 + $0x40] sm:$0xff] (%p67_p10)  ;;  %v673_v1 = vld [vmem:[#allocation8 + $0x50] sm:$0xff] (%p67_p10)  ;;  %s1101_s20 = smov (%p67_p10), [#allocation9]  }
  0x3c   :  { %s815_s21 = sshll.u32 (%p67_p10), %s1101_s20, 4  ;;  %s816_s21 = int_to_ptr.vmem [resolvable:$true] %s815_s21 }
  0x3d   :  { %s1057_s22 = scalar_lea.vmem (%p67_p10), %s816_s21, 128  ;;  %p1062_p12 = scmp.lt.s32.totalorder (%p67_p10), %s816_s21, %s816_s21 }
  0x3e   :  { %p1058_p11 = scmp.ne.s32.totalorder (%p67_p10), %s816_s21, %s1057_s22  ;;  %p1063_p13 = scmp.lt.s32.totalorder (%p67_p10), %s1057_s22, %s1057_s22 }
  0x40   :  { %p1064_p0 = por (%p67_p10), %p1063_p13, %p1062_p12 }
  0x42   :  { %p1065_p1 = pnand (%p67_p10), %p1064_p0, %p1058_p11 }
  0x77   : > { %108 = vxpose.xlu0.b32.start.end [1/1] (short) %v75_v4, 128 }
  0xba   : > { %v92_v5 = vpop.trf.xlu0 }
  0xbb   : > { %837 = vmatmul.mubr.msk.f32.vlgmr.msra.gmra.mrb[0].mxu0 %vm140_vm0, %v92_v5 }
  0xbc   : > { %307 = vmatprep.mubr.f32.mxu0 %v1098_v2 }
  0xbe   : > { %v93_v6 = vpop.trf.xlu0 }
  0xbf   : > { %838 = vmatmul.mubr.msk.f32.gmra.mrb[2].mxu0 %vm140_vm0, %v93_v6 }
  0xc0   : > { %313 = vmatprep.mubr.f32.mxu0 %v1098_v2 }
  0xc2   : > { %v94_v7 = vpop.trf.xlu0 }
  0xc3   : > { %839 = vmatmul.mubr.msk.f32.gmra.mrb[4].mxu0 %vm140_vm0, %v94_v7 }
  0xc4   : > { %319 = vmatprep.mubr.f32.mxu0 %v1098_v2 }
  0xc6   : > { %v95_v8 = vpop.trf.xlu0 }
  0xc7   : > { %840 = vmatmul.mubr.msk.f32.gmra.mrb[6].mxu0 %vm140_vm0, %v95_v8 }
  0xc8   : > { %325 = vmatprep.mubr.f32.mxu0 %v1098_v2 }
  0xca   : > { %v96_v9 = vpop.trf.xlu0 }
  0xcb   : > { %841 = vmatmul.mubr.msk.f32.gmra.mrb[8].mxu0 %vm140_vm0, %v96_v9 }
  0xcc   : > { %331 = vmatprep.mubr.f32.mxu0 %v1098_v2 }
  0xce   : > { %v97_v10 = vpop.trf.xlu0 }
  0xcf   : > { %842 = vmatmul.mubr.msk.f32.gmra.mrb[10].mxu0 %vm140_vm0, %v97_v10 }
  0xd0   : > { %337 = vmatprep.mubr.f32.mxu0 %v1098_v2 }
  0xd2   : > { %v98_v11 = vpop.trf.xlu0 }
  0xd3   : > { %843 = vmatmul.mubr.msk.f32.gmra.mrb[12].mxu0 %vm140_vm0, %v98_v11 }
  0xd4   : > { %343 = vmatprep.mubr.f32.mxu0 %v1098_v2 }
  0xd6   : > { %v99_v12 = vpop.trf.xlu0 }
  0xd7   : > { %844 = vmatmul.mubr.msk.f32.gmra.mrb[14].mxu0 %vm140_vm0, %v99_v12 }
  0xd8   : > { %349 = vmatprep.mubr.f32.mxu0 %v1098_v2 }
  0xda   : > { %v100_v13 = vpop.trf.xlu0 }
  0xdb   : > { %845 = vmatmul.mubr.msk.f32.gmra.mrb[16].mxu0 %vm140_vm0, %v100_v13 }
  0xdc   : > { %355 = vmatprep.mubr.f32.mxu0 %v1098_v2 }
  0xde   : > { %v101_v14 = vpop.trf.xlu0 }
  0xdf   : > { %846 = vmatmul.mubr.msk.f32.gmra.mrb[18].mxu0 %vm140_vm0, %v101_v14 }
  0xe0   : > { %361 = vmatprep.mubr.f32.mxu0 %v1098_v2 }
  0xe2   : > { %v102_v15 = vpop.trf.xlu0 }
  0xe3   : > { %847 = vmatmul.mubr.msk.f32.gmra.mrb[20].mxu0 %vm140_vm0, %v102_v15 }
  0xe4   : > { %367 = vmatprep.mubr.f32.mxu0 %v1098_v2 }
  0xe6   : > { %v103_v16 = vpop.trf.xlu0 }
  0xe7   : > { %848 = vmatmul.mubr.msk.f32.gmra.mrb[22].mxu0 %vm140_vm0, %v103_v16 }
  0xe8   : > { %373 = vmatprep.mubr.f32.mxu0 %v1098_v2 }
  0xea   : > { %v104_v17 = vpop.trf.xlu0 }
  0xeb   : > { %849 = vmatmul.mubr.msk.f32.gmra.mrb[24].mxu0 %vm140_vm0, %v104_v17 }
  0xec   : > { %379 = vmatprep.mubr.f32.mxu0 %v1098_v2 }
  0xee   : > { %v105_v18 = vpop.trf.xlu0 }
  0xef   : > { %850 = vmatmul.mubr.msk.f32.gmra.mrb[26].mxu0 %vm140_vm0, %v105_v18 }
  0xf0   : > { %385 = vmatprep.mubr.f32.mxu0 %v1098_v2 }
  0xf2   : > { %v106_v19 = vpop.trf.xlu0 }
  0xf3   : > { %851 = vmatmul.mubr.msk.f32.gmra.mrb[28].mxu0 %vm140_vm0, %v106_v19 }
  0xf4   : > { %391 = vmatprep.mubr.f32.mxu0 %v1098_v2 }
  0xf6   : > { %v107_v20 = vpop.trf.xlu0 }
  0xf7   : > { %852 = vmatmul.mubr.msk.f32.gmra.mrb[30].mxu0 %vm140_vm0, %v107_v20 }
  0xf8   : > { %397 = vmatprep.mubr.f32.mxu0 %v1098_v2 }
  0xfa   : > { %v124_v21 = vpop.trf.xlu0 }
  0xfb   : > { %853 = vmatmul.mubr.msk.f32.gmra.mrb[32].mxu0 %vm140_vm0, %v124_v21 }
  0xfc   : > { %403 = vmatprep.mubr.f32.mxu0 %v1098_v2 }
  0xfe   : > { %v125_v22 = vpop.trf.xlu0 }
  0xff   : > { %854 = vmatmul.mubr.msk.f32.gmra.mrb[34].mxu0 %vm140_vm0, %v125_v22 }
 0x100   : > { %409 = vmatprep.mubr.f32.mxu0 %v1098_v2 }
 0x102   : > { %v126_v23 = vpop.trf.xlu0 }
 0x103   : > { %855 = vmatmul.mubr.msk.f32.gmra.mrb[36].mxu0 %vm140_vm0, %v126_v23 }
 0x104   : > { %415 = vmatprep.mubr.f32.mxu0 %v1098_v2 }
 0x106   : > { %v127_v24 = vpop.trf.xlu0 }
 0x107   : > { %856 = vmatmul.mubr.msk.f32.gmra.mrb[38].mxu0 %vm140_vm0, %v127_v24 }
 0x108   : > { %421 = vmatprep.mubr.f32.mxu0 %v1098_v2 }
 0x10a   : > { %v128_v25 = vpop.trf.xlu0 }
 0x10b   : > { %857 = vmatmul.mubr.msk.f32.gmra.mrb[40].mxu0 %vm140_vm0, %v128_v25 }
 0x10c   : > { %427 = vmatprep.mubr.f32.mxu0 %v1098_v2 }
 0x10e   : > { %v129_v26 = vpop.trf.xlu0 }
 0x10f   : > { %858 = vmatmul.mubr.msk.f32.gmra.mrb[42].mxu0 %vm140_vm0, %v129_v26 }
 0x110   : > { %433 = vmatprep.mubr.f32.mxu0 %v1098_v2 }
 0x112   : > { %v130_v27 = vpop.trf.xlu0 }
 0x113   : > { %859 = vmatmul.mubr.msk.f32.gmra.mrb[44].mxu0 %vm140_vm0, %v130_v27 }
 0x114   : > { %439 = vmatprep.mubr.f32.mxu0 %v1098_v2 }
 0x116   : > { %v131_v28 = vpop.trf.xlu0 }
 0x117   : > { %860 = vmatmul.mubr.msk.f32.gmra.mrb[46].mxu0 %vm140_vm0, %v131_v28 }
 0x118   : > { %445 = vmatprep.mubr.f32.mxu0 %v1098_v2 }
 0x11a   : > { %v132_v29 = vpop.trf.xlu0 }
 0x11b   : > { %861 = vmatmul.mubr.msk.f32.gmra.mrb[48].mxu0 %vm140_vm0, %v132_v29 }
 0x11c   : > { %451 = vmatprep.mubr.f32.mxu0 %v1098_v2 }
 0x11e   : > { %v133_v30 = vpop.trf.xlu0 }
 0x11f   : > { %862 = vmatmul.mubr.msk.f32.gmra.mrb[50].mxu0 %vm140_vm0, %v133_v30 }
 0x120   : > { %457 = vmatprep.mubr.f32.mxu0 %v1098_v2 }
 0x122   : > { %v134_v31 = vpop.trf.xlu0 }
 0x123   : > { %863 = vmatmul.mubr.msk.f32.gmra.mrb[52].mxu0 %vm140_vm0, %v134_v31 }
 0x124   : > { %463 = vmatprep.mubr.f32.mxu0 %v1098_v2 }
 0x126   : > { %v135_v32 = vpop.trf.xlu0 }
 0x127   : > { %864 = vmatmul.mubr.msk.f32.gmra.mrb[54].mxu0 %vm140_vm0, %v135_v32 }
 0x128   : > { %469 = vmatprep.mubr.f32.mxu0 %v1098_v2 }
 0x12a   : > { %v136_v33 = vpop.trf.xlu0 }
 0x12b   : > { %865 = vmatmul.mubr.msk.f32.gmra.mrb[56].mxu0 %vm140_vm0, %v136_v33 }
 0x12c   : > { %475 = vmatprep.mubr.f32.mxu0 %v1098_v2 }
 0x12e   : > { %v137_v34 = vpop.trf.xlu0 }
 0x12f   : > { %866 = vmatmul.mubr.msk.f32.gmra.mrb[58].mxu0 %vm140_vm0, %v137_v34 }
 0x130   : > { %481 = vmatprep.mubr.f32.mxu0 %v1098_v2 }
 0x132   : > { %v138_v35 = vpop.trf.xlu0 }
 0x133   : > { %867 = vmatmul.mubr.msk.f32.gmra.mrb[60].mxu0 %vm140_vm0, %v138_v35 }
 0x134   : > { %487 = vmatprep.mubr.f32.mxu0 %v1098_v2 }
 0x136   : > { %v139_v36 = vpop.trf.xlu0 }
 0x137   : > { %868 = vmatmul.mubr.msk.f32.gmra.mrb[62].mxu0 %vm140_vm0, %v139_v36 }
 0x18e   : > { %v303_v37 = vpop.f32.mrb[0].mxu0 }
 0x18f   : > { %v305_v38 = vpop.f32.mrb[1].mxu0  ;;  %v494_v41 = vmax.f32 %v303_v37, 0.0 }
 0x190   : > { %v495_v44 = vmax.f32 %v305_v38, 0.0 }
 0x192   : > { %v309_v39 = vpop.f32.mrb[2].mxu0 }
 0x193   : > { %v496_v42 = vmax.f32 %v309_v39, 0.0  ;;  %v311_v43 = vpop.f32.mrb[3].mxu0 }
 0x194   : > { %v497_v45 = vmax.f32 %v311_v43, 0.0 }
 0x195   : > { %v878_v46 = vpack.c.bf16 %v496_v42, %v494_v41 }
 0x196   : > { %v315_v47 = vpop.f32.mrb[4].mxu0  ;;  %v876_v48 = vpack.c.bf16 %v497_v45, %v495_v44 }
 0x197   : > { %v317_v49 = vpop.f32.mrb[5].mxu0  ;;  %v498_v51 = vmax.f32 %v315_v47, 0.0 }
 0x198   : > { %877 = vmatprep.subr.bf16.mxu1 %v876_v48  ;;  %v499_v54 = vmax.f32 %v317_v49, 0.0 }
 0x199   : > { %879 = vmatpush1.bf16.msra.mxu1 %v878_v46 }
 0x19a   : > { %v321_v50 = vpop.f32.mrb[6].mxu0 }
 0x19b   : > { %v500_v52 = vmax.f32 %v321_v50, 0.0  ;;  %v323_v53 = vpop.f32.mrb[7].mxu0 }
 0x19c   : > { %v501_v55 = vmax.f32 %v323_v53, 0.0 }
 0x19d   : > { %v882_v56 = vpack.c.bf16 %v500_v52, %v498_v51 }
 0x19e   : > { %v880_v57 = vpack.c.bf16 %v501_v55, %v499_v54  ;;  %v327_v58 = vpop.f32.mrb[8].mxu0 }
 0x19f   : > { %v329_v59 = vpop.f32.mrb[9].mxu0  ;;  %v502_v61 = vmax.f32 %v327_v58, 0.0 }
 0x1a0   : > { %881 = vmatprep.subr.bf16.mxu1 %v880_v57  ;;  %v503_v2 = vmax.f32 %v329_v59, 0.0 }
 0x1a1   : > { %883 = vmatpush1.bf16.msra.mxu1 %v882_v56 }
 0x1a2   : > { %v333_v60 = vpop.f32.mrb[10].mxu0 }
 0x1a3   : > { %v504_v62 = vmax.f32 %v333_v60, 0.0  ;;  %v335_v63 = vpop.f32.mrb[11].mxu0 }
 0x1a4   : > { %v505_v3 = vmax.f32 %v335_v63, 0.0 }
 0x1a5   : > { %v886_v4 = vpack.c.bf16 %v504_v62, %v502_v61 }
 0x1a6   : > { %v884_v5 = vpack.c.bf16 %v505_v3, %v503_v2  ;;  %v339_v6 = vpop.f32.mrb[12].mxu0 }
 0x1a7   : > { %v341_v7 = vpop.f32.mrb[13].mxu0  ;;  %v506_v9 = vmax.f32 %v339_v6, 0.0 }
 0x1a8   : > { %885 = vmatprep.subr.bf16.mxu1 %v884_v5  ;;  %v507_v12 = vmax.f32 %v341_v7, 0.0 }
 0x1a9   : > { %887 = vmatpush1.bf16.msra.mxu1 %v886_v4 }
 0x1aa   : > { %v345_v8 = vpop.f32.mrb[14].mxu0 }
 0x1ab   : > { %v508_v10 = vmax.f32 %v345_v8, 0.0  ;;  %v347_v11 = vpop.f32.mrb[15].mxu0 }
 0x1ac   : > { %v509_v13 = vmax.f32 %v347_v11, 0.0 }
 0x1ad   : > { %v890_v14 = vpack.c.bf16 %v508_v10, %v506_v9 }
 0x1ae   : > { %v888_v15 = vpack.c.bf16 %v509_v13, %v507_v12  ;;  %v351_v16 = vpop.f32.mrb[16].mxu0 }
 0x1af   : > { %v353_v17 = vpop.f32.mrb[17].mxu0  ;;  %v510_v19 = vmax.f32 %v351_v16, 0.0 }
 0x1b0   : > { %889 = vmatprep.subr.bf16.mxu1 %v888_v15  ;;  %v511_v22 = vmax.f32 %v353_v17, 0.0 }
 0x1b1   : > { %891 = vmatpush1.bf16.msra.mxu1 %v890_v14 }
 0x1b2   : > { %v357_v18 = vpop.f32.mrb[18].mxu0 }
 0x1b3   : > { %v512_v20 = vmax.f32 %v357_v18, 0.0  ;;  %v359_v21 = vpop.f32.mrb[19].mxu0 }
 0x1b4   : > { %v513_v23 = vmax.f32 %v359_v21, 0.0 }
 0x1b5   : > { %v894_v24 = vpack.c.bf16 %v512_v20, %v510_v19 }
 0x1b6   : > { %v892_v25 = vpack.c.bf16 %v513_v23, %v511_v22  ;;  %v363_v26 = vpop.f32.mrb[20].mxu0 }
 0x1b7   : > { %v365_v27 = vpop.f32.mrb[21].mxu0  ;;  %v514_v29 = vmax.f32 %v363_v26, 0.0 }
 0x1b8   : > { %893 = vmatprep.subr.bf16.mxu1 %v892_v25  ;;  %v515_v32 = vmax.f32 %v365_v27, 0.0 }
 0x1b9   : > { %895 = vmatpush1.bf16.msra.mxu1 %v894_v24 }
 0x1ba   : > { %v369_v28 = vpop.f32.mrb[22].mxu0 }
 0x1bb   : > { %v516_v30 = vmax.f32 %v369_v28, 0.0  ;;  %v371_v31 = vpop.f32.mrb[23].mxu0 }
 0x1bc   : > { %v517_v33 = vmax.f32 %v371_v31, 0.0 }
 0x1bd   : > { %v898_v34 = vpack.c.bf16 %v516_v30, %v514_v29 }
 0x1be   : > { %v896_v35 = vpack.c.bf16 %v517_v33, %v515_v32  ;;  %v375_v36 = vpop.f32.mrb[24].mxu0 }
 0x1bf   : > { %v377_v37 = vpop.f32.mrb[25].mxu0  ;;  %v518_v39 = vmax.f32 %v375_v36, 0.0 }
 0x1c0   : > { %897 = vmatprep.subr.bf16.mxu1 %v896_v35  ;;  %v519_v43 = vmax.f32 %v377_v37, 0.0 }
 0x1c1   : > { %899 = vmatpush1.bf16.msra.mxu1 %v898_v34 }
 0x1c2   : > { %v381_v38 = vpop.f32.mrb[26].mxu0 }
 0x1c3   : > { %v520_v41 = vmax.f32 %v381_v38, 0.0  ;;  %v383_v42 = vpop.f32.mrb[27].mxu0 }
 0x1c4   : > { %v521_v44 = vmax.f32 %v383_v42, 0.0 }
 0x1c5   : > { %v902_v45 = vpack.c.bf16 %v520_v41, %v518_v39 }
 0x1c6   : > { %v900_v46 = vpack.c.bf16 %v521_v44, %v519_v43  ;;  %v387_v47 = vpop.f32.mrb[28].mxu0 }
 0x1c7   : > { %v389_v48 = vpop.f32.mrb[29].mxu0  ;;  %v522_v50 = vmax.f32 %v387_v47, 0.0 }
 0x1c8   : > { %901 = vmatprep.subr.bf16.mxu1 %v900_v46  ;;  %v523_v53 = vmax.f32 %v389_v48, 0.0 }
 0x1c9   : > { %903 = vmatpush1.bf16.msra.mxu1 %v902_v45 }
 0x1ca   : > { %v393_v49 = vpop.f32.mrb[30].mxu0 }
 0x1cb   : > { %v524_v51 = vmax.f32 %v393_v49, 0.0  ;;  %v395_v52 = vpop.f32.mrb[31].mxu0 }
 0x1cc   : > { %v525_v54 = vmax.f32 %v395_v52, 0.0 }
 0x1cd   : > { %v906_v55 = vpack.c.bf16 %v524_v51, %v522_v50 }
 0x1ce   : > { %v904_v56 = vpack.c.bf16 %v525_v54, %v523_v53  ;;  %v399_v57 = vpop.f32.mrb[32].mxu0 }
 0x1cf   : > { %v401_v58 = vpop.f32.mrb[33].mxu0  ;;  %v526_v60 = vmax.f32 %v399_v57, 0.0 }
 0x1d0   : > { %905 = vmatprep.subr.bf16.mxu1 %v904_v56  ;;  %v527_v63 = vmax.f32 %v401_v58, 0.0 }
 0x1d1   : > { %907 = vmatpush1.bf16.msra.mxu1 %v906_v55 }
 0x1d2   : > { %v405_v59 = vpop.f32.mrb[34].mxu0 }
 0x1d3   : > { %v528_v61 = vmax.f32 %v405_v59, 0.0  ;;  %v407_v62 = vpop.f32.mrb[35].mxu0 }
 0x1d4   : > { %v529_v2 = vmax.f32 %v407_v62, 0.0 }
 0x1d5   : > { %v910_v3 = vpack.c.bf16 %v528_v61, %v526_v60 }
 0x1d6   : > { %v908_v4 = vpack.c.bf16 %v529_v2, %v527_v63  ;;  %v411_v5 = vpop.f32.mrb[36].mxu0 }
 0x1d7   : > { %v413_v6 = vpop.f32.mrb[37].mxu0  ;;  %v530_v8 = vmax.f32 %v411_v5, 0.0 }
 0x1d8   : > { %909 = vmatprep.subr.bf16.mxu1 %v908_v4  ;;  %v531_v11 = vmax.f32 %v413_v6, 0.0 }
 0x1d9   : > { %911 = vmatpush1.bf16.msra.mxu1 %v910_v3 }
 0x1da   : > { %v417_v7 = vpop.f32.mrb[38].mxu0 }
 0x1db   : > { %v532_v9 = vmax.f32 %v417_v7, 0.0  ;;  %v419_v10 = vpop.f32.mrb[39].mxu0 }
 0x1dc   : > { %v533_v12 = vmax.f32 %v419_v10, 0.0 }
 0x1dd   : > { %v914_v13 = vpack.c.bf16 %v532_v9, %v530_v8 }
 0x1de   : > { %v912_v14 = vpack.c.bf16 %v533_v12, %v531_v11  ;;  %v423_v15 = vpop.f32.mrb[40].mxu0 }
 0x1df   : > { %v425_v16 = vpop.f32.mrb[41].mxu0  ;;  %v534_v18 = vmax.f32 %v423_v15, 0.0 }
 0x1e0   : > { %913 = vmatprep.subr.bf16.mxu1 %v912_v14  ;;  %v535_v21 = vmax.f32 %v425_v16, 0.0  ;;  %v1100_v14 = vmov 1966171168   ;;  %v635_v16 = vlaneseq }
 0x1e1   : > { %915 = vmatpush1.bf16.msra.mxu1 %v914_v13  ;;  %v633_v15 = vunpack.c.l.s4 %v1100_v14 }
 0x1e2   : > { %v429_v17 = vpop.f32.mrb[42].mxu0  ;;  %vm649_vm1 = vcmp.lt.s32.totalorder %v635_v16, 256 }
 0x1e3   : > { %v536_v19 = vmax.f32 %v429_v17, 0.0  ;;  %v431_v20 = vpop.f32.mrb[43].mxu0  ;;  %v634_v17 = vunpack.c.0.s8 %v633_v15 }
 0x1e4   : > { %v537_v22 = vmax.f32 %v431_v20, 0.0 }
 0x1e5   : > { %v918_v23 = vpack.c.bf16 %v536_v19, %v534_v18  ;;  %v636_v18 = vshrl.u32 %v635_v16, 7 }
 0x1e6   : > { %v916_v24 = vpack.c.bf16 %v537_v22, %v535_v21  ;;  %v435_v25 = vpop.f32.mrb[44].mxu0 }
 0x1e7   : > { %v437_v26 = vpop.f32.mrb[45].mxu0  ;;  %v538_v28 = vmax.f32 %v435_v25, 0.0  ;;  %v637_v20 = vsub.s32 %v634_v17, %v636_v18  ;;  %v666_v25 = vld [vmem:[#allocation8 + $0x18] sm:$0xff] (%p67_p10) }
 0x1e8   : > { %917 = vmatprep.subr.bf16.mxu1 %v916_v24  ;;  %v539_v31 = vmax.f32 %v437_v26, 0.0  ;;  %v663_v26 = vld [vmem:[#allocation8] sm:$0xff] (%p67_p10) }
 0x1e9   : > { %919 = vmatpush1.bf16.msra.mxu1 %v918_v23 }
 0x1ea   : > { %v441_v27 = vpop.f32.mrb[46].mxu0 }
 0x1eb   : > { %v540_v29 = vmax.f32 %v441_v27, 0.0  ;;  %v443_v30 = vpop.f32.mrb[47].mxu0 }
 0x1ec   : > { %v541_v32 = vmax.f32 %v443_v30, 0.0  ;;  %v670_v30 = vld [vmem:[#allocation8 + $0x38] sm:$0xff] (%p67_p10) }
 0x1ed   : > { %v922_v33 = vpack.c.bf16 %v540_v29, %v538_v28  ;;  %v665_v28 = vld [vmem:[#allocation8 + $0x10] sm:$0xff] (%p67_p10)  ;;  %v668_v29 = vld [vmem:[#allocation8 + $0x28] sm:$0xff] (%p67_p10) }
 0x1ee   : > { %v920_v34 = vpack.c.bf16 %v541_v32, %v539_v31  ;;  %v447_v35 = vpop.f32.mrb[48].mxu0  ;;  %v942_v31 = vpack.c.bf16 (%p67_p10), %v665_v28, %v663_v26  ;;  %v944_v32 = vpack.c.bf16 (%p67_p10), %v670_v30, %v668_v29 }
 0x1ef   : > { %v449_v36 = vpop.f32.mrb[49].mxu0  ;;  %v542_v38 = vmax.f32 %v447_v35, 0.0  ;;  %v672_v35 = vld [vmem:[#allocation8 + $0x48] sm:$0xff] (%p67_p10) }
 0x1f0   : > { %921 = vmatprep.subr.bf16.mxu1 %v920_v34  ;;  %v543_v42 = vmax.f32 %v449_v36, 0.0  ;;  %v669_v34 = vld [vmem:[#allocation8 + $0x30] sm:$0xff] (%p67_p10)  ;;  %v674_v36 = vld [vmem:[#allocation8 + $0x58] sm:$0xff] (%p67_p10) }
 0x1f1   : > { %923 = vmatpush1.bf16.msra.mxu1 %v922_v33  ;;  %v667_v33 = vld [vmem:[#allocation8 + $0x20] sm:$0xff] (%p67_p10) }
 0x1f2   : > { %v453_v37 = vpop.f32.mrb[50].mxu0 }
 0x1f3   : > { %v544_v39 = vmax.f32 %v453_v37, 0.0  ;;  %v455_v41 = vpop.f32.mrb[51].mxu0  ;;  %v946_v37 = vpack.c.bf16 (%p67_p10), %v669_v34, %v667_v33  ;;  %v873_v34 = vld [vmem:[%s1289_s5] ss:$0 sm:$0xff] (%p67_p10) }
 0x1f4   : > { %v545_v43 = vmax.f32 %v455_v41, 0.0  ;;  %v676_v41 = vld [vmem:[#allocation8 + $0x68] sm:$0xff] (%p67_p10) }
 0x1f5   : > { %v926_v44 = vpack.c.bf16 %v544_v39, %v542_v38  ;;  %v948_v38 = vpack.c.bf16 (%p67_p10), %v674_v36, %v672_v35 }
 0x1f6   : > { %v924_v45 = vpack.c.bf16 %v545_v43, %v543_v42  ;;  %v459_v46 = vpop.f32.mrb[52].mxu0  ;;  %v678_v42 = vld [vmem:[#allocation8 + $0x78] sm:$0xff] (%p67_p10)  ;;  %v950_v43 = vpack.c.bf16 (%p67_p10), %v673_v1, %v671_v0 }
 0x1f7   : > { %v461_v47 = vpop.f32.mrb[53].mxu0  ;;  %v546_v49 = vmax.f32 %v459_v46, 0.0  ;;  %v677_v46 = vld [vmem:[#allocation8 + $0x70] sm:$0xff] (%p67_p10) }
 0x1f8   : > { %925 = vmatprep.subr.bf16.mxu1 %v924_v45  ;;  %v547_v52 = vmax.f32 %v461_v47, 0.0  ;;  %v675_v45 = vld [vmem:[#allocation8 + $0x60] sm:$0xff] (%p67_p10)  ;;  %v680_v47 = vld [vmem:[#allocation8 + $0x88] sm:$0xff] (%p67_p10) }
 0x1f9   : > { %927 = vmatpush1.bf16.msra.mxu1 %v926_v44  ;;  %v952_v44 = vpack.c.bf16 (%p67_p10), %v678_v42, %v676_v41 }
 0x1fa   : > { %v465_v48 = vpop.f32.mrb[54].mxu0 }
 0x1fb   : > { %v548_v50 = vmax.f32 %v465_v48, 0.0  ;;  %v467_v51 = vpop.f32.mrb[55].mxu0  ;;  %v682_v48 = vld [vmem:[#allocation8 + $0x98] sm:$0xff] (%p67_p10) }
 0x1fc   : > { %v549_v53 = vmax.f32 %v467_v51, 0.0  ;;  %v679_v51 = vld [vmem:[#allocation8 + $0x80] sm:$0xff] (%p67_p10) }
 0x1fd   : > { %v930_v54 = vpack.c.bf16 %v548_v50, %v546_v49  ;;  %v954_v49 = vpack.c.bf16 (%p67_p10), %v677_v46, %v675_v45  ;;  %v956_v50 = vpack.c.bf16 (%p67_p10), %v682_v48, %v680_v47 }
 0x1fe   : > { %v928_v55 = vpack.c.bf16 %v549_v53, %v547_v52  ;;  %v471_v56 = vpop.f32.mrb[56].mxu0  ;;  %v681_v52 = vld [vmem:[#allocation8 + $0x90] sm:$0xff] (%p67_p10)  ;;  %v684_v53 = vld [vmem:[#allocation8 + $0xa8] sm:$0xff] (%p67_p10) }
 0x1ff   : > { %v473_v57 = vpop.f32.mrb[57].mxu0  ;;  %v550_v59 = vmax.f32 %v471_v56, 0.0 }
 0x200   : > { %929 = vmatprep.subr.bf16.mxu1 %v928_v55  ;;  %v551_v62 = vmax.f32 %v473_v57, 0.0  ;;  %v958_v55 = vpack.c.bf16 (%p67_p10), %v681_v52, %v679_v51  ;;  %v683_v57 = vld [vmem:[#allocation8 + $0xa0] sm:$0xff] (%p67_p10) }
 0x201   : > { %931 = vmatpush1.bf16.msra.mxu1 %v930_v54  ;;  %v686_v54 = vld [vmem:[#allocation8 + $0xb8] sm:$0xff] (%p67_p10) }
 0x202   : > { %v477_v58 = vpop.f32.mrb[58].mxu0  ;;  %v960_v56 = vpack.c.bf16 (%p67_p10), %v686_v54, %v684_v53 }
 0x203   : > { %v552_v60 = vmax.f32 %v477_v58, 0.0  ;;  %v479_v61 = vpop.f32.mrb[59].mxu0  ;;  %v685_v58 = vld [vmem:[#allocation8 + $0xb0] sm:$0xff] (%p67_p10) }
 0x204   : > { %v553_v63 = vmax.f32 %v479_v61, 0.0  ;;  %v962_v61 = vpack.c.bf16 (%p67_p10), %v685_v58, %v683_v57 }
 0x205   : > { %v934_v2 = vpack.c.bf16 %v552_v60, %v550_v59  ;;  %v688_v59 = vld [vmem:[#allocation8 + $0xc8] sm:$0xff] (%p67_p10)  ;;  %v690_v60 = vld [vmem:[#allocation8 + $0xd8] sm:$0xff] (%p67_p10) }
 0x206   : > { %v932_v3 = vpack.c.bf16 %v553_v63, %v551_v62  ;;  %v483_v4 = vpop.f32.mrb[60].mxu0  ;;  %v964_v62 = vpack.c.bf16 (%p67_p10), %v690_v60, %v688_v59  ;;  %v687_v63 = vld [vmem:[#allocation8 + $0xc0] sm:$0xff] (%p67_p10) }
 0x207   : > { %v485_v5 = vpop.f32.mrb[61].mxu0  ;;  %v554_v7 = vmax.f32 %v483_v4, 0.0  ;;  %v694_v4 = vld [vmem:[#allocation8 + $0xf8] sm:$0xff] (%p67_p10) }
 0x208   : > { %933 = vmatprep.subr.bf16.mxu1 %v932_v3  ;;  %v555_v10 = vmax.f32 %v485_v5, 0.0  ;;  %v692_v3 = vld [vmem:[#allocation8 + $0xe8] sm:$0xff] (%p67_p10) }
 0x209   : > { %935 = vmatpush1.bf16.msra.mxu1 %v934_v2  ;;  %v689_v2 = vld [vmem:[#allocation8 + $0xd0] sm:$0xff] (%p67_p10) }
 0x20a   : > { %v489_v6 = vpop.f32.mrb[62].mxu0  ;;  %v966_v5 = vpack.c.bf16 (%p67_p10), %v689_v2, %v687_v63 }
 0x20b   : > { %v556_v8 = vmax.f32 %v489_v6, 0.0  ;;  %v491_v9 = vpop.f32.mrb[63].mxu0  ;;  %v968_v6 = vpack.c.bf16 (%p67_p10), %v694_v4, %v692_v3 }
 0x20c   : > { %v557_v11 = vmax.f32 %v491_v9, 0.0 }
 0x20d   : > { %v938_v12 = vpack.c.bf16 %v556_v8, %v554_v7  ;;  %v691_v7 = vld [vmem:[#allocation8 + $0xe0] sm:$0xff] (%p67_p10)  ;;  %v693_v8 = vld [vmem:[#allocation8 + $0xf0] sm:$0xff] (%p67_p10) }
 0x20e   : > { %v936_v13 = vpack.c.bf16 %v557_v11, %v555_v10  ;;  %v970_v9 = vpack.c.bf16 (%p67_p10), %v693_v8, %v691_v7  ;;  %v871_v11 = vld [vmem:[%s1287_s3] ss:$0 sm:$0xff] (%p67_p10) }
 0x210   : > { %937 = vmatprep.subr.bf16.mxu1 %v936_v13 }
 0x211   : > { %939 = vmatpush1.bf16.msra.mxu1 %v938_v12 }
 0x214   : > { %623 = vmatmul.mubr.f32.vlgmr.msra.gmra.mrb[0].mxu1 %v1099_v40  ;;  %v664_v40 = vld [vmem:[#allocation8 + $0x8] sm:$0xff] (%p67_p10) }
 0x215   :  { %v940_v27 = vpack.c.bf16 (%p67_p10), %v666_v25, %v664_v40 }
 0x217   :  { %941 = vmatprep.subr.bf16.mxu0 (%p67_p10), %v940_v27 }
 0x218   :  { %943 = vmatpush1.bf16.xpose.msra.mxu0 (%p67_p10), %v942_v31 }
 0x219   :  { %945 = vmatprep.subr.bf16.mxu0 (%p67_p10), %v944_v32  ;;  %v872_v32 = vld [vmem:[%s1288_s4] ss:$0 sm:$0xff] (%p67_p10) }
 0x220   :  { %947 = vmatpush1.bf16.xpose.msra.mxu0 (%p67_p10), %v946_v37 }
 0x221   :  { %949 = vmatprep.subr.bf16.mxu0 (%p67_p10), %v948_v38 }
 0x228   :  { %951 = vmatpush1.bf16.xpose.msra.mxu0 (%p67_p10), %v950_v43 }
 0x229   :  { %953 = vmatprep.subr.bf16.mxu0 (%p67_p10), %v952_v44 }
 0x230   :  { %955 = vmatpush1.bf16.xpose.msra.mxu0 (%p67_p10), %v954_v49 }
 0x231   :  { %957 = vmatprep.subr.bf16.mxu0 (%p67_p10), %v956_v50 }
 0x238   :  { %959 = vmatpush1.bf16.xpose.msra.mxu0 (%p67_p10), %v958_v55 }
 0x239   :  { %961 = vmatprep.subr.bf16.mxu0 (%p67_p10), %v960_v56 }
 0x240   :  { %963 = vmatpush1.bf16.xpose.msra.mxu0 (%p67_p10), %v962_v61 }
 0x241   :  { %965 = vmatprep.subr.bf16.mxu0 (%p67_p10), %v964_v62 }
 0x248   :  { %967 = vmatpush1.bf16.xpose.msra.mxu0 (%p67_p10), %v966_v5 }
 0x249   :  { %969 = vmatprep.subr.bf16.mxu0 (%p67_p10), %v968_v6 }
 0x250   :  { %971 = vmatpush1.bf16.xpose.msra.mxu0 (%p67_p10), %v970_v9 }
 0x2e7   : > { %v624_v19 = vpop.f32.mrb[0].mxu1 }
 0x2e8   : > { %v626_v21 = vpop.f32.mrb[1].mxu1 }
 0x2e9   : > { %v631_v22 = vcombine.low %v624_v19, %v626_v21  ;;  %69 = sbr.rel (!%p67_p10) target bundleno = 55 (0x37), region = 65 }
 0x2eb   : > { %v638_v23 = vrot.slane %v631_v22, %v637_v20 }
 0x2ed   : > { %v645_v24 = vrot.slane %v638_v23, %v637_v20 }
 0x2ef   : > { %659 = vst.msk [vmem:[%s658_s15] ss:$8 sm:$0x3] %vm649_vm1, %v645_v24 }
 0x2f6   :  { %v662_v39 = vld [vmem:[#allocation2 + $0x8] sm:$0xff]  ;;  %v661_v10 = vld [vmem:[#allocation2] sm:$0xff] }
 0x2f7   :  { %766 = vmatprep.mubr.f32.mxu0 %v662_v39 }
 0x2f8   :  { %767 = vmatmul.mubr.f32.vlgmr.msra.gmra.mrb[0].mxu0 %v661_v10 }
 0x3cb   :  { %v768_v12 = vpop.f32.mrb[0].mxu0 }
 0x3cc   :  { %v769_v13 = vadd.f32 %v871_v11, %v768_v12  ;;  %v770_v14 = vpop.f32.mrb[1].mxu0 }
 0x3ce   :  { %v772_v15 = vrot.slane %v769_v13, 4 }
 0x3d0   :  { %v773_v16 = vadd.f32 %v772_v15, %v769_v13 }
 0x3d2   :  { %v774_v17 = vrot.slane %v773_v16, 2 }
 0x3d4   :  { %v775_v18 = vadd.f32 %v774_v17, %v773_v16 }
 0x3d6   :  { %v776_v19 = vrot.slane %v775_v18, 1 }
 0x3d8   :  { %v777_v20 = vadd.f32 %v776_v19, %v775_v18 }
 0x3da   :  { %v779_v21 = vmul.f32 0.125, %v777_v20 }
 0x3dc   :  { %v780_v22 = vsub.f32 %v769_v13, %v779_v21 }
 0x3de   :  { %v781_v23 = vmul.f32 %v780_v22, %v780_v22 }
 0x3e0   :  { %v782_v24 = vrot.slane %v781_v23, 4 }
 0x3e2   :  { %v783_v40 = vadd.f32 %v782_v24, %v781_v23 }
 0x3e4   :  { %v784_v25 = vrot.slane %v783_v40, 2 }
 0x3e6   :  { %v785_v26 = vadd.f32 %v784_v25, %v783_v40 }
 0x3e8   :  { %v786_v27 = vrot.slane %v785_v26, 1 }
 0x3ea   :  { %v787_v28 = vadd.f32 %v786_v27, %v785_v26 }
 0x3ec   :  { %v788_v29 = vmul.f32 0.125, %v787_v28 }
 0x3ee   :  { %v789_v30 = vadd.f32 1e-05, %v788_v29 }
 0x3f0   :  { %989 = vrsqrt.f32 %v789_v30 }
 0x3fa   :  { %v990_v31 = vpop.eup %989 }
 0x3fb   :  { %v791_v33 = vmul.f32 %v990_v31, %v780_v22 }
 0x3fd   :  { %v799_v35 = vmul.f32 %v872_v32, %v791_v33 }
 0x3ff   :  { %v807_v36 = vadd.f32 %v873_v34, %v799_v35 }
 0x401   :  { %808 = vst [vmem:[#allocation9] sm:$0xff] %v807_v36 }
 0x402   :  { %1068 = shalt.err (!%p1065_p1)
}
 0x403   :  { %s1069_s25 = scalar_lea.hbm %s1290_s6, 128 }
 0x404   :  { %p1070_p2 = scmp.ne.s32.totalorder %s1290_s6, %s1069_s25  ;;  %p1073_p3 = scmp.lt.u32.totalorder %s1069_s25, %s1290_s6 }
 0x406   :  { %p1075_p4 = pnand %p1073_p3, %p1070_p2 }
 0x408   :  { %1078 = shalt.err (!%p1075_p4)
}
 0x409   :  { %818 = dma.vmem_to_hbm [thread:$0]  %s816_s21, 128, %s1290_s6, [#allocation5]  }
 0x40a   :  { %1087 = dma.done.wait [#allocation5], 128  }
 0x40b   :  { %1088 = vsyncadd [#allocation5], 4294967168 }
 0x40c   :  { %822 = vsyncpa [#allocation4], 1 }
 0x40d   :  { %823 = vsyncpa [#allocation7], 1 }
 0x40e   :  { %824 = vsyncpa [#allocation5], 1 }

</bundles_post_ra>
